<compile_context>
chip_gen: v7x
topology: tpu7x:2x2x1
jax: 0.10.0
libtpu: 0.0.40
codegen_flags: <defaults>
</compile_context>

<pallas_src>
import functools

import jax
import jax.numpy as jnp
from jax import lax
from jax.experimental import pallas as pl
from jax.experimental.pallas import tpu as pltpu


def _cross_entropy_kernel(n_rows, logits_ref, tgt_ref, out_ref):
    # logits_ref: (TILE_N, C) native dtype in VMEM
    # tgt_ref:    (TILE_N, 1) int32       in VMEM
    # out_ref:    (1, 1)      float32     in VMEM (resident accumulator)
    i = pl.program_id(0)

    @pl.when(i == 0)
    def _init():
        out_ref[...] = jnp.zeros_like(out_ref)

    logits = logits_ref[...].astype(jnp.float32)          # free VPU cast (bf16 -> f32)
    tgt = tgt_ref[...]                                    # (TILE_N, 1) int32
    tile_n, c = logits.shape

    # One-hot target mask on the lane axis (built once, reused).
    col_ids = lax.broadcasted_iota(jnp.int32, (tile_n, c), 1)
    is_tgt = col_ids == tgt                               # (TILE_N, C) bool

    # Row max (stable lse) and target-logit gather in the same sweep.
    m = jnp.max(logits, axis=-1, keepdims=True)                           # (TILE_N, 1)
    tgt_logit = jnp.sum(jnp.where(is_tgt, logits, 0.0),
                        axis=-1, keepdims=True)                           # (TILE_N, 1)

    lse = m + jnp.log(jnp.sum(jnp.exp(logits - m), axis=-1, keepdims=True))
    per_row = lse - tgt_logit                                             # -log p(c_i)

    # Mask rows past N in the final (possibly partial) tile.
    row_ids = i * tile_n + lax.broadcasted_iota(jnp.int32, (tile_n, 1), 0)
    per_row = jnp.where(row_ids < n_rows, per_row, 0.0)

    # Accumulate the tile's partial sum as a (1,1) vector op (no scalar stores).
    out_ref[...] += jnp.sum(per_row, axis=0, keepdims=True)

    @pl.when(i == pl.num_programs(0) - 1)
    def _finalize():
        out_ref[...] = out_ref[...] * jnp.float32(1.0 / n_rows)           # mean


def _pick_tile_n(n, c, itemsize, vmem_budget_bytes=16 * 1024 * 1024):
    """Largest row tile such that 2 pipeline buffers of (logits + target) tiles
    fit a budget that is safe on every TPU generation (v7x: 64 MiB physical)."""
    bytes_per_row = c * itemsize + 4                      # logits row + one int32 target
    tile = vmem_budget_bytes // (2 * bytes_per_row)
    tile = min(int(tile), 1024, n)
    if tile < n:                                          # keep sublane dim 8-aligned
        tile = max(8, (tile // 8) * 8)
    return max(1, tile)


def cross_entropy(lambda_t, Lambda_t, c, *, tile_n=None):
    """Pallas equivalent of CrossEntropy.forward(lambda_t, Lambda_t, c)."""
    del lambda_t                                          # unused by the reference forward
    logits = Lambda_t                                     # keep native dtype; cast in-kernel
    targets = c[:, 0:1].astype(jnp.int32)                 # (N, 1)
    n, num_classes = logits.shape
    itemsize = jnp.dtype(logits.dtype).itemsize

    if tile_n is None:
        tile_n = _pick_tile_n(n, num_classes, itemsize)
    num_tiles = pl.cdiv(n, tile_n)

    # TODO(synk): for LLM-vocab-sized C (class row not fitting one tile) add an
    # inner class-tile grid axis with online logsumexp + online target select.

    out = pl.pallas_call(
        functools.partial(_cross_entropy_kernel, n),
        out_shape=jax.ShapeDtypeStruct((1, 1), jnp.float32),
        grid=(num_tiles,),
        in_specs=[
            pl.BlockSpec((tile_n, num_classes), lambda i: (i, 0)),
            pl.BlockSpec((tile_n, 1), lambda i: (i, 0)),
        ],
        # Same block index every step => output stays resident in VMEM across
        # the whole grid (accumulator) and is written back to HBM once.
        out_specs=pl.BlockSpec((1, 1), lambda i: (0, 0)),
        compiler_params=pltpu.CompilerParams(
            # Row axis carries the scalar accumulator -> must be "arbitrary".
            dimension_semantics=("arbitrary",),
            vmem_limit_bytes=32 * 1024 * 1024,
        ),
        cost_estimate=pl.CostEstimate(
            flops=3 * n * num_classes,
            transcendentals=n * num_classes,
            bytes_accessed=n * num_classes * itemsize + n * 4 + 4,
        ),
    )(logits, targets)
    return out[0, 0]


def _reference(Lambda_t, c):
    # Pure-JAX reference of nn.CrossEntropyLoss()(Lambda_t, c[:, 0]).
    logits = Lambda_t.astype(jnp.float32)
    tgt = c[:, 0].astype(jnp.int32)
    logp = jax.nn.log_softmax(logits, axis=-1)
    return -jnp.mean(jnp.take_along_axis(logp, tgt[:, None], axis=-1))


if __name__ == "__main__":
    key = jax.random.PRNGKey(0)
    k1, k2, k3, k4, k5 = jax.random.split(key, 5)

    # Config 1: module-sized demo (batch, num_event_types), f32 logits.
    batch, num_classes = 8, 32
    lambda_t = jax.random.uniform(k1, (batch, num_classes), dtype=jnp.float32)
    Lambda_t = jax.random.normal(k2, (batch, num_classes), dtype=jnp.float32)
    c = jax.random.randint(k3, (batch, 2), 0, num_classes, dtype=jnp.int32)

    loss = jax.block_until_ready(cross_entropy(lambda_t, Lambda_t, c))
    ref = _reference(Lambda_t, c)
    assert jnp.allclose(loss, ref, atol=1e-5, rtol=1e-5), (loss, ref)

    # Config 2: bf16 logits, multi-tile row grid with a masked partial tile.
    n2, c2 = 20, 128
    Lambda2 = jax.random.normal(k4, (n2, c2), dtype=jnp.bfloat16)
    cls2 = jax.random.randint(k5, (n2, 2), 0, c2, dtype=jnp.int32)
    loss2 = jax.block_until_ready(cross_entropy(None, Lambda2, cls2, tile_n=8))
    ref2 = _reference(Lambda2, cls2)
    assert jnp.allclose(loss2, ref2, atol=1e-4, rtol=1e-4), (loss2, ref2)

    print("KERNEL_OK")
</pallas_src>

<mosaic_0001>
module attributes {stable_mosaic.version = 11 : i64} {
  func.func @_cross_entropy_kernel(%arg0: i32, %arg1: memref<8x32xf32, #tpu.memory_space<vmem>>, %arg2: memref<8x1xi32, #tpu.memory_space<vmem>>, %arg3: memref<1x1xf32, #tpu.memory_space<vmem>>) attributes {dimension_semantics = [#tpu.dimension_semantics<arbitrary>], iteration_bounds = array<i64: 1>, scalar_prefetch = 0 : i64, scratch_operands = 0 : i64, tpu.core_type = #tpu.core_type<tc>, window_params = [{transform_indices = @transform_0, window_bounds = array<i64: 8, 32>}, {transform_indices = @transform_1, window_bounds = array<i64: 8, 1>}, {pipeline_mode = #tpu.pipeline_mode<synchronous>, transform_indices = @transform_2, window_bounds = array<i64: 1, 1>}]} {
    %c0_i32 = arith.constant 0 : i32
    %0 = arith.cmpi eq, %arg0, %c0_i32 : i32
    %1 = arith.extui %0 : i1 to i32
    %c0_i32_0 = arith.constant 0 : i32
    %2 = arith.cmpi ne, %1, %c0_i32_0 : i32
    scf.if %2 {
      %cst_16 = arith.constant 0.000000e+00 : f32
      %38 = vector.broadcast %cst_16 : f32 to vector<1x1xf32>
      %c0_17 = arith.constant 0 : index
      %c0_18 = arith.constant 0 : index
      %39 = vector.load %arg3[%c0_17, %c0_18] : memref<1x1xf32, #tpu.memory_space<vmem>>, vector<1x1xf32>
      tpu.vector_store %arg3[%c0_17, %c0_18], %38 {strides = array<i32>} : memref<1x1xf32, #tpu.memory_space<vmem>>, vector<1x1xf32>,
    } else {
    }
    %c0 = arith.constant 0 : index
    %c0_1 = arith.constant 0 : index
    %3 = vector.load %arg1[%c0, %c0_1] : memref<8x32xf32, #tpu.memory_space<vmem>>, vector<8x32xf32>
    %c0_2 = arith.constant 0 : index
    %c0_3 = arith.constant 0 : index
    %4 = vector.load %arg2[%c0_2, %c0_3] : memref<8x1xi32, #tpu.memory_space<vmem>>, vector<8x1xi32>
    %5 = tpu.iota {dimensions = array<i32: 1>} : vector<8x32xi32>
    %6 = vector.broadcast %4 : vector<8x1xi32> to vector<8x32xi32>
    %7 = arith.cmpi eq, %5, %6 : vector<8x32xi32>
    %cst = arith.constant dense<0xFF800000> : vector<8xf32>
    %8 = vector.multi_reduction <maximumf>, %3, %cst [1] : vector<8x32xf32> to vector<8xf32>
    %9 = vector.shape_cast %8 : vector<8xf32> to vector<8x1xf32>
    %cst_4 = arith.constant 0.000000e+00 : f32
    %10 = vector.broadcast %cst_4 : f32 to vector<8x32xf32>
    %11 = arith.select %7, %3, %10 : vector<8x32xi1>, vector<8x32xf32>
    %cst_5 = arith.constant dense<0.000000e+00> : vector<8xf32>
    %12 = vector.multi_reduction <add>, %11, %cst_5 [1] : vector<8x32xf32> to vector<8xf32>
    %13 = vector.shape_cast %12 : vector<8xf32> to vector<8x1xf32>
    %14 = vector.broadcast %9 : vector<8x1xf32> to vector<8x32xf32>
    %15 = arith.subf %3, %14 : vector<8x32xf32>
    %16 = math.exp %15 : vector<8x32xf32>
    %cst_6 = arith.constant dense<0.000000e+00> : vector<8xf32>
    %17 = vector.multi_reduction <add>, %16, %cst_6 [1] : vector<8x32xf32> to vector<8xf32>
    %18 = vector.shape_cast %17 : vector<8xf32> to vector<8x1xf32>
    %19 = math.log %18 : vector<8x1xf32>
    %20 = arith.addf %9, %19 : vector<8x1xf32>
    %21 = arith.subf %20, %13 : vector<8x1xf32>
    %c8_i32 = arith.constant 8 : i32
    %22 = arith.muli %arg0, %c8_i32 : i32
    %23 = tpu.iota {dimensions = array<i32: 0>} : vector<8x1xi32>
    %24 = vector.broadcast %22 : i32 to vector<8x1xi32>
    %25 = arith.addi %24, %23 : vector<8x1xi32>
    %c8_i32_7 = arith.constant 8 : i32
    %26 = vector.broadcast %c8_i32_7 : i32 to vector<8x1xi32>
    %27 = arith.cmpi slt, %25, %26 : vector<8x1xi32>
    %cst_8 = arith.constant 0.000000e+00 : f32
    %28 = vector.broadcast %cst_8 : f32 to vector<8x1xf32>
    %29 = arith.select %27, %21, %28 : vector<8x1xi1>, vector<8x1xf32>
    %c0_9 = arith.constant 0 : index
    %c0_10 = arith.constant 0 : index
    %30 = vector.load %arg3[%c0_9, %c0_10] : memref<1x1xf32, #tpu.memory_space<vmem>>, vector<1x1xf32>
    %cst_11 = arith.constant dense<0.000000e+00> : vector<1xf32>
    %31 = vector.multi_reduction <add>, %29, %cst_11 [0] : vector<8x1xf32> to vector<1xf32>
    %32 = vector.shape_cast %31 : vector<1xf32> to vector<1x1xf32>
    %33 = arith.addf %30, %32 : vector<1x1xf32>
    %c0_12 = arith.constant 0 : index
    %c0_13 = arith.constant 0 : index
    %34 = vector.load %arg3[%c0_12, %c0_13] : memref<1x1xf32, #tpu.memory_space<vmem>>, vector<1x1xf32>
    tpu.vector_store %arg3[%c0_12, %c0_13], %33 {strides = array<i32>} : memref<1x1xf32, #tpu.memory_space<vmem>>, vector<1x1xf32>,
    %c0_i32_14 = arith.constant 0 : i32
    %35 = arith.cmpi eq, %arg0, %c0_i32_14 : i32
    %36 = arith.extui %35 : i1 to i32
    %c0_i32_15 = arith.constant 0 : i32
    %37 = arith.cmpi ne, %36, %c0_i32_15 : i32
    scf.if %37 {
      %c0_16 = arith.constant 0 : index
      %c0_17 = arith.constant 0 : index
      %38 = vector.load %arg3[%c0_16, %c0_17] : memref<1x1xf32, #tpu.memory_space<vmem>>, vector<1x1xf32>
      %cst_18 = arith.constant 1.250000e-01 : f32
      %39 = vector.broadcast %cst_18 : f32 to vector<1x1xf32>
      %40 = arith.mulf %38, %39 : vector<1x1xf32>
      %c0_19 = arith.constant 0 : index
      %c0_20 = arith.constant 0 : index
      %41 = vector.load %arg3[%c0_19, %c0_20] : memref<1x1xf32, #tpu.memory_space<vmem>>, vector<1x1xf32>
      tpu.vector_store %arg3[%c0_19, %c0_20], %40 {strides = array<i32>} : memref<1x1xf32, #tpu.memory_space<vmem>>, vector<1x1xf32>,
    } else {
    }
    return
  }
  func.func @transform_0(%arg0: i32) -> (i32, i32) {
    %c0_i32 = arith.constant 0 : i32
    %c0_i32_0 = arith.constant 0 : i32
    return %arg0, %c0_i32 : i32, i32
  }
  func.func @transform_1(%arg0: i32) -> (i32, i32) {
    %c0_i32 = arith.constant 0 : i32
    %c0_i32_0 = arith.constant 0 : i32
    return %arg0, %c0_i32 : i32, i32
  }
  func.func @transform_2(%arg0: i32) -> (i32, i32) {
    %c0_i32 = arith.constant 0 : i32
    %c0_i32_0 = arith.constant 0 : i32
    %c0_i32_1 = arith.constant 0 : i32
    return %c0_i32, %c0_i32_0 : i32, i32
  }
}

</mosaic_0001>

<bundles_post_ra>
// kernel: tpu_custom_call.1
= control target key start
LH: loop header
LB: loop body
LE: loop exit
PB: predicated region body
PF: predicated region fallthrough
CT: control target
= control target key end

     0   :  { %vm26_vm0 = vcmask 261120   ;;  %s155_s0 = inlined_call_operand.vmem [shape: f32[8,32], index: 0, kind: input, shape index: {}]   ;;  %s156_s1 = inlined_call_operand.vmem [shape: s32[8,1], index: 1, kind: input, shape index: {}]   ;;  %s157_s2 = inlined_call_operand.hbm [shape: f32[1,1], index: 2, kind: output, shape index: {}]  }
   0x1   :  { %v18_v0 = vld [vmem:[%s155_s0] sm:$0xff] }
   0x2   :  { %7 = vsyncpa [#allocation3], 0  ;;  %v27_v1 = vsel %vm26_vm0, %v18_v0, -inf  ;;  %v113_v2 = vmov 0   ;;  %v19_v3 = vld [vmem:[%s156_s1] sm:$0xff]  ;;  %v20_v7 = vlaneseq  ;;  %vm16_vm2 = vcmask 0  }
   0x3   :  { %84 = vset.pattern.permute.xlu0 %v113_v2  ;;  %v114_v14 = vmov 0.0   ;;  %s115_s0 = smov [#allocation2]  }
   0x4   :  { %28 = vmax.xlane.f32.xlu0 %v27_v1  ;;  %v21_v8 = vand.u32 127, %v20_v7  ;;  %17 = vst.msk [vmem:[#allocation2] sm:$0x1] %vm16_vm2, %v114_v14  ;;  %s73_s1 = sshll.u32 %s115_s0, 4  ;;  %s74_s1 = int_to_ptr.vmem [resolvable:$true] %s73_s1 }
   0x5   :  { %s89_s13 = scalar_lea.vmem %s74_s1, 16  ;;  %s93_s14 = scalar_lea.vmem %s74_s1, 32 }
   0x6   :  { %p90_p0 = scmp.ne.s32.totalorder %s74_s1, %s89_s13  ;;  %p94_p1 = scmp.lt.s32.totalorder %s74_s1, %s74_s1 }
   0x7   :  { %p95_p2 = scmp.lt.s32.totalorder %s93_s14, %s89_s13 }
   0x9   :  { %p96_p3 = por %p95_p2, %p94_p1 }
   0xb   :  { %v51_v26 = vld [vmem:[#allocation2] sm:$0x1]  ;;  %p97_p4 = pnand %p96_p3, %p90_p0 }
  0x1a   :  { %23 = vperm.xlu0 %84, %v19_v3  }
  0x91   :  { %v29_v4 = vpop.xlane.xlu0 %28 }
  0x92   :  { %v34_v5 = vsub.f32 %v18_v0, %v29_v4 }
  0x94   :  { %v35_v6 = vmul.f32 1.442695, %v34_v5 }
  0x96   :  { %85 = vpow2.f32 %v35_v6 }
  0x99   :  { %v24_v9 = vpop.permute.xlu0 %23 }
  0x9a   :  { %vm25_vm1 = vcmp.eq.s32.totalorder %v21_v8, %v24_v9 }
  0x9b   :  { %v30_v11 = vsel %vm25_vm1, %v18_v0, 0.0 }
  0x9c   :  { %v31_v13 = vsel %vm26_vm0, %v30_v11, 0.0 }
  0xa0   :  { %v86_v10 = vpop.eup %85 }
  0xa1   :  { %v37_v12 = vsel %vm26_vm0, %v86_v10, 0.0 }
  0xa2   :  { %38 = vadd.xlane.f32.xlu1 %v37_v12 }
  0xa6   :  { %32 = vadd.xlane.f32.xlu1 %v31_v13 }
 0x12f   :  { %v39_v15 = vpop.xlane.xlu1 %38 }
 0x130   :  { %87 = vlog2.f32 %v39_v15 }
 0x133   :  { %v33_v18 = vpop.xlane.xlu1 %32 }
 0x13a   :  { %v88_v16 = vpop.eup %87 }
 0x13b   :  { %v41_v17 = vmul.f32 0.6931472, %v88_v16 }
 0x13d   :  { %v42_v19 = vadd.f32 %v41_v17, %v29_v4 }
 0x13f   :  { %v43_v20 = vsub.f32 %v42_v19, %v33_v18 }
 0x141   :  { %v52_v21 = vrot.slane %v43_v20, 4 }
 0x143   :  { %v53_v22 = vadd.f32 %v52_v21, %v43_v20 }
 0x145   :  { %v54_v23 = vrot.slane %v53_v22, 2 }
 0x147   :  { %v55_v24 = vadd.f32 %v54_v23, %v53_v22 }
 0x149   :  { %v56_v25 = vrot.slane %v55_v24, 1 }
 0x14b   :  { %v57_v27 = vadd.f32 %v56_v25, %v55_v24 }
 0x14d   :  { %v58_v28 = vadd.f32 %v57_v27, %v51_v26 }
 0x14f   :  { %60 = vst.msk [vmem:[#allocation2] sm:$0x1] %vm16_vm2, %v58_v28 }
 0x156   :  { %v64_v29 = vld [vmem:[#allocation2] sm:$0x1] }
 0x157   :  { %v65_v30 = vmul.f32 0.125, %v64_v29 }
 0x159   :  { %66 = vst.msk [vmem:[#allocation2] sm:$0x1] %vm16_vm2, %v65_v30 }
 0x15a   :  { %100 = shalt.err (!%p97_p4)
}
 0x15b   :  { %s101_s17 = scalar_lea.hbm %s157_s2, 16 }
 0x15c   :  { %p102_p5 = scmp.ne.s32.totalorder %s157_s2, %s101_s17  ;;  %p105_p6 = scmp.lt.u32.totalorder %s101_s17, %s157_s2 }
 0x15e   :  { %p107_p7 = pnand %p105_p6, %p102_p5 }
 0x160   :  { %110 = shalt.err (!%p107_p7)
}
 0x161   :  { %76 = dma.vmem_to_hbm [thread:$0]  %s74_s1, 16, %s157_s2, [#allocation3]  }
 0x162   :  { %111 = dma.done.wait [#allocation3], 16  }
 0x163   :  { %112 = vsyncadd [#allocation3], 4294967280 }
 0x164   :  { %80 = vsyncpa [#allocation3], 1 }

</bundles_post_ra>
